<compile_context>
chip_gen: v7x
topology: tpu7x:2x2x1
jax: 0.10.0
libtpu: 0.0.40
codegen_flags: <defaults>
</compile_context>

<pallas_src>
import math
import functools

import jax
import jax.numpy as jnp
from jax.experimental import pallas as pl
from jax.experimental.pallas import tpu as pltpu

HIDDEN_DIMS = [16, 32, 64]
TIME_EMBED_DIM = 32
BN_EPS = 1e-5


def _pick_act_dtype():
    """bf16 activations/weights only on chips whose VPU/EUP/MXU have bf16 paths."""
    try:
        kind = jax.devices()[0].device_kind.lower()
    except Exception:
        return jnp.float32
    if any(tag in kind for tag in ("v6", "v7", "7x")):
        return jnp.bfloat16
    return jnp.float32


_ACT_DTYPE = _pick_act_dtype()


def _silu(z):
    # sigmoid via tanh -> exactly one EUP transcendental per element.
    return z * (0.5 * jnp.tanh(0.5 * z) + 0.5)


def score_kernel(xyt_ref, freq_ref,
                 w0x_ref, w0y_ref, w0sc_ref, b0_ref,
                 w1_ref, b1_ref,
                 w2_ref, b2_ref,
                 w3_ref, b3_ref,
                 o_ref):
    act = w0sc_ref.dtype                    # bf16 on v6e/v7x, f32 otherwise

    xyt = xyt_ref[...]                      # (3, TB): rows = x, y_t, t (lane-dense)
    x = xyt[0:1, :]
    y = xyt[1:2, :]
    t = xyt[2:3, :]

    # Sinusoidal time embedding, transposed layout.  Args stay f32 (t can be
    # O(1e3); bf16 args would destroy the phase); results cast to `act`.
    arg = freq_ref[...] * t                                      # (16, TB)
    emb = jnp.concatenate([jnp.sin(arg), jnp.cos(arg)], axis=0)  # (32, TB), 8-sublane aligned stack
    emb = emb.astype(act)

    # Layer 0 (Linear+BN folded): rank-1 updates for the x / y_t columns plus a
    # single fused (16,32)x(32,TB) matmul over the [sin|cos] embedding.
    z = (w0x_ref[...] * x
         + w0y_ref[...] * y
         + jnp.dot(w0sc_ref[...], emb, preferred_element_type=jnp.float32)
         + b0_ref[...])
    h = _silu(z.astype(act))                                     # (16, TB)

    # Layers 1 / 2 (Linear+BN folded) -> SiLU (Dropout = identity in eval).
    h = _silu((jnp.dot(w1_ref[...], h, preferred_element_type=jnp.float32)
               + b1_ref[...]).astype(act))                       # (32, TB)
    h = _silu((jnp.dot(w2_ref[...], h, preferred_element_type=jnp.float32)
               + b2_ref[...]).astype(act))                       # (64, TB)

    # Final Linear(64 -> 1) as an f32 sublane reduction -> lane-dense (1, TB) store.
    o_ref[...] = (jnp.sum(w3_ref[...] * h.astype(jnp.float32), axis=0, keepdims=True)
                  + b3_ref[...])


def init_params(key):
    """Deterministic parameter init (shapes match the PyTorch module: W is (out, in))."""
    dims = [2 + TIME_EMBED_DIM] + HIDDEN_DIMS + [1]
    params = []
    for i in range(len(dims) - 1):
        fan_in, fan_out = dims[i], dims[i + 1]
        key, kw, kb = jax.random.split(key, 3)
        bound = 1.0 / math.sqrt(fan_in)
        w = jax.random.uniform(kw, (fan_out, fan_in), jnp.float32, -bound, bound)
        b = jax.random.uniform(kb, (fan_out,), jnp.float32, -bound, bound)
        params.append((w, b))
    # BatchNorm1d params / running stats (randomized so BN folding is exercised).
    bn = []
    for h in HIDDEN_DIMS:
        key, kg, kb2, km, kv = jax.random.split(key, 5)
        gamma = jax.random.uniform(kg, (h,), jnp.float32, 0.5, 1.5)
        beta = 0.1 * jax.random.normal(kb2, (h,), jnp.float32)
        rmean = 0.1 * jax.random.normal(km, (h,), jnp.float32)
        rvar = jax.random.uniform(kv, (h,), jnp.float32, 0.5, 1.5)
        bn.append((gamma, beta, rmean, rvar))
    return params, bn


def timestep_freqs_col():
    """(half_dim, 1) frequency column for the transposed layout."""
    half = TIME_EMBED_DIM // 2
    emb = math.log(10000.0) / (half - 1)
    return jnp.exp(jnp.arange(half, dtype=jnp.float32) * -emb)[:, None]


def _fold_bn(w, b, gamma, beta, rmean, rvar):
    """Fold eval-mode BatchNorm1d into a (out, in) Linear.  Returns W', b' (out, 1)."""
    scale = gamma * jax.lax.rsqrt(rvar + BN_EPS)           # (out,)
    w_f = w * scale[:, None]
    b_f = (b - rmean) * scale + beta
    return w_f, b_f[:, None]


def _round_up(n, m):
    return ((n + m - 1) // m) * m


@functools.partial(jax.jit, static_argnames=("tile_b", "act_dtype"))
def score_model_forward(x, y_t, t, params, bn, tile_b=8192, act_dtype=_ACT_DTYPE):
    B = x.shape[0]

    # --- trace-time parameter prep (BN folding, layer-0 split, transposition) ---
    (w0, b0), (w1, b1), (w2, b2), (w3, b3) = params
    (g0, be0, rm0, rv0), (g1, be1, rm1, rv1), (g2, be2, rm2, rv2) = bn

    w0f, b0f = _fold_bn(w0, b0, g0, be0, rm0, rv0)         # (16, 34), (16, 1)
    w1f, b1f = _fold_bn(w1, b1, g1, be1, rm1, rv1)         # (32, 16), (32, 1)
    w2f, b2f = _fold_bn(w2, b2, g2, be2, rm2, rv2)         # (64, 32), (64, 1)

    w0x = w0f[:, 0:1]                                       # (16, 1) column for x
    w0y = w0f[:, 1:2]                                       # (16, 1) column for y_t
    w0sc = w0f[:, 2:2 + TIME_EMBED_DIM].astype(act_dtype)   # (16, 32) fused [sin|cos]
    w1a = w1f.astype(act_dtype)
    w2a = w2f.astype(act_dtype)
    w3t = w3.T                                              # (64, 1) f32
    b3r = b3.reshape(1, 1)
    freqs = timestep_freqs_col()                            # (16, 1)

    # --- batch tiling: lane-dense, balanced tiles, >=2 tiles for v7x megacore ---
    b_pad128 = _round_up(B, 128)
    num_tiles = max(1, -(-b_pad128 // tile_b))
    if num_tiles == 1 and b_pad128 >= 256:
        num_tiles = 2                       # let the "parallel" axis use both TCs on v7x
    tb = _round_up(-(-b_pad128 // num_tiles), 128)          # balanced -> waste < 128/tile
    num_tiles = -(-b_pad128 // tb)
    b_full = num_tiles * tb

    # Single stacked per-sample input: one fused stack+pad in the wrapper and a
    # single per-step input DMA instead of three.
    xyt = jnp.stack([x, y_t, t]).astype(jnp.float32)        # (3, B)
    xyt = jnp.pad(xyt, ((0, 0), (0, b_full - B)))           # (3, b_full)

    row_spec = pl.BlockSpec((3, tb), lambda i: (0, i))

    def const_spec(a):   # full-array block, resident in VMEM across the grid
        return pl.BlockSpec(a.shape, lambda i: (0, 0))

    args = (xyt, freqs, w0x, w0y, w0sc, b0f, w1a, b1f, w2a, b2f, w3t, b3r)
    in_specs = [row_spec] + [const_spec(a) for a in args[1:]]

    cost = pl.CostEstimate(
        flops=2 * B * (16 * 32 + 32 * 16 + 64 * 32 + 64 + 2 * 16),
        transcendentals=B * (TIME_EMBED_DIM + sum(HIDDEN_DIMS)),     # 144 / sample
        bytes_accessed=4 * B * 4)                                    # x, y_t, t in; score out

    out = pl.pallas_call(
        score_kernel,
        out_shape=jax.ShapeDtypeStruct((1, b_full), jnp.float32),
        grid=(num_tiles,),
        in_specs=in_specs,
        out_specs=pl.BlockSpec((1, tb), lambda i: (0, i)),
        compiler_params=pltpu.CompilerParams(
            dimension_semantics=("parallel",),
            vmem_limit_bytes=32 * 1024 * 1024),
        cost_estimate=cost,
    )(*args)
    return out[0, :B]                                       # squeeze(-1)


def reference_forward(x, y_t, t, params, bn):
    """Plain-JAX reference (PyTorch semantics, (B, F) layout) for correctness check."""
    half = TIME_EMBED_DIM // 2
    emb = math.log(10000.0) / (half - 1)
    freqs = jnp.exp(jnp.arange(half, dtype=jnp.float32) * -emb)
    arg = t[:, None] * freqs[None, :]
    t_emb = jnp.concatenate([jnp.sin(arg), jnp.cos(arg)], axis=-1)
    h = jnp.concatenate([x[:, None], y_t[:, None], t_emb], axis=-1)
    for (w, b), (g, be, rm, rv) in zip(params[:-1], bn):
        z = h @ w.T + b
        z = (z - rm) / jnp.sqrt(rv + BN_EPS) * g + be
        h = z * jax.nn.sigmoid(z)
    w, b = params[-1]
    return (h @ w.T + b)[:, 0]


if __name__ == "__main__":
    key = jax.random.PRNGKey(0)
    kp, kx, ky, kt = jax.random.split(key, 4)

    params, bn = init_params(kp)

    B = 8
    x = jax.random.normal(kx, (B,), jnp.float32)
    y_t = jax.random.normal(ky, (B,), jnp.float32)
    t = jax.random.uniform(kt, (B,), jnp.float32, 0.0, 1000.0)

    out = score_model_forward(x, y_t, t, params, bn)
    out = jax.block_until_ready(out)

    ref = reference_forward(x, y_t, t, params, bn)
    tol = 1e-4 if _ACT_DTYPE == jnp.float32 else 5e-2   # bf16 activations on v6e/v7x
    assert out.shape == (B,)
    assert jnp.allclose(out, ref, atol=tol, rtol=tol), (out, ref)

    print("KERNEL_OK")
</pallas_src>

<mosaic_0001>
module attributes {stable_mosaic.version = 11 : i64} {
  func.func @score_kernel(%arg0: i32, %arg1: memref<3x128xf32, #tpu.memory_space<vmem>>, %arg2: memref<16x1xf32, #tpu.memory_space<vmem>>, %arg3: memref<16x1xf32, #tpu.memory_space<vmem>>, %arg4: memref<16x1xf32, #tpu.memory_space<vmem>>, %arg5: memref<16x32xf32, #tpu.memory_space<vmem>>, %arg6: memref<16x1xf32, #tpu.memory_space<vmem>>, %arg7: memref<32x16xf32, #tpu.memory_space<vmem>>, %arg8: memref<32x1xf32, #tpu.memory_space<vmem>>, %arg9: memref<64x32xf32, #tpu.memory_space<vmem>>, %arg10: memref<64x1xf32, #tpu.memory_space<vmem>>, %arg11: memref<64x1xf32, #tpu.memory_space<vmem>>, %arg12: memref<1x1xf32, #tpu.memory_space<vmem>>, %arg13: memref<1x128xf32, #tpu.memory_space<vmem>>) attributes {dimension_semantics = [#tpu.dimension_semantics<parallel>], iteration_bounds = array<i64: 1>, scalar_prefetch = 0 : i64, scratch_operands = 0 : i64, tpu.core_type = #tpu.core_type<tc>, window_params = [{transform_indices = @transform_0, window_bounds = array<i64: 3, 128>}, {pipeline_mode = #tpu.pipeline_mode<synchronous>, transform_indices = @transform_1, window_bounds = array<i64: 16, 1>}, {pipeline_mode = #tpu.pipeline_mode<synchronous>, transform_indices = @transform_2, window_bounds = array<i64: 16, 1>}, {pipeline_mode = #tpu.pipeline_mode<synchronous>, transform_indices = @transform_3, window_bounds = array<i64: 16, 1>}, {pipeline_mode = #tpu.pipeline_mode<synchronous>, transform_indices = @transform_4, window_bounds = array<i64: 16, 32>}, {pipeline_mode = #tpu.pipeline_mode<synchronous>, transform_indices = @transform_5, window_bounds = array<i64: 16, 1>}, {pipeline_mode = #tpu.pipeline_mode<synchronous>, transform_indices = @transform_6, window_bounds = array<i64: 32, 16>}, {pipeline_mode = #tpu.pipeline_mode<synchronous>, transform_indices = @transform_7, window_bounds = array<i64: 32, 1>}, {pipeline_mode = #tpu.pipeline_mode<synchronous>, transform_indices = @transform_8, window_bounds = array<i64: 64, 32>}, {pipeline_mode = #tpu.pipeline_mode<synchronous>, transform_indices = @transform_9, window_bounds = array<i64: 64, 1>}, {pipeline_mode = #tpu.pipeline_mode<synchronous>, transform_indices = @transform_10, window_bounds = array<i64: 64, 1>}, {pipeline_mode = #tpu.pipeline_mode<synchronous>, transform_indices = @transform_11, window_bounds = array<i64: 1, 1>}, {transform_indices = @transform_12, window_bounds = array<i64: 1, 128>}]} {
    %c0 = arith.constant 0 : index
    %c0_0 = arith.constant 0 : index
    %0 = vector.load %arg1[%c0, %c0_0] : memref<3x128xf32, #tpu.memory_space<vmem>>, vector<3x128xf32>
    %1 = vector.extract_strided_slice %0 {offsets = [0, 0], sizes = [1, 128], strides = [1, 1]} : vector<3x128xf32> to vector<1x128xf32>
    %2 = vector.extract_strided_slice %0 {offsets = [1, 0], sizes = [1, 128], strides = [1, 1]} : vector<3x128xf32> to vector<1x128xf32>
    %3 = vector.extract_strided_slice %0 {offsets = [2, 0], sizes = [1, 128], strides = [1, 1]} : vector<3x128xf32> to vector<1x128xf32>
    %c0_1 = arith.constant 0 : index
    %c0_2 = arith.constant 0 : index
    %4 = vector.load %arg2[%c0_1, %c0_2] : memref<16x1xf32, #tpu.memory_space<vmem>>, vector<16x1xf32>
    %5 = vector.broadcast %4 : vector<16x1xf32> to vector<16x128xf32>
    %6 = vector.broadcast %3 : vector<1x128xf32> to vector<16x128xf32>
    %7 = arith.mulf %5, %6 : vector<16x128xf32>
    %8 = math.sin %7 : vector<16x128xf32>
    %9 = math.cos %7 : vector<16x128xf32>
    %10 = tpu.concatenate %8, %9 in 0 : vector<16x128xf32>, vector<16x128xf32> -> vector<32x128xf32>
    %c0_3 = arith.constant 0 : index
    %c0_4 = arith.constant 0 : index
    %11 = vector.load %arg3[%c0_3, %c0_4] : memref<16x1xf32, #tpu.memory_space<vmem>>, vector<16x1xf32>
    %12 = vector.broadcast %11 : vector<16x1xf32> to vector<16x128xf32>
    %13 = vector.broadcast %1 : vector<1x128xf32> to vector<16x128xf32>
    %14 = arith.mulf %12, %13 : vector<16x128xf32>
    %c0_5 = arith.constant 0 : index
    %c0_6 = arith.constant 0 : index
    %15 = vector.load %arg4[%c0_5, %c0_6] : memref<16x1xf32, #tpu.memory_space<vmem>>, vector<16x1xf32>
    %16 = vector.broadcast %15 : vector<16x1xf32> to vector<16x128xf32>
    %17 = vector.broadcast %2 : vector<1x128xf32> to vector<16x128xf32>
    %18 = arith.mulf %16, %17 : vector<16x128xf32>
    %19 = arith.addf %14, %18 : vector<16x128xf32>
    %c0_7 = arith.constant 0 : index
    %c0_8 = arith.constant 0 : index
    %20 = vector.load %arg5[%c0_7, %c0_8] : memref<16x32xf32, #tpu.memory_space<vmem>>, vector<16x32xf32>
    %cst = arith.constant dense<0.000000e+00> : vector<16x128xf32>
    %21 = tpu.matmul %20, %10, %cst {dimension_numbers = #tpu.dot_dimension_numbers<[1], [0], [0], [1], [0, 0, 1, 1], [], []>} : vector<16x32xf32>, vector<32x128xf32>, vector<16x128xf32> -> vector<16x128xf32>
    %22 = arith.addf %19, %21 : vector<16x128xf32>
    %c0_9 = arith.constant 0 : index
    %c0_10 = arith.constant 0 : index
    %23 = vector.load %arg6[%c0_9, %c0_10] : memref<16x1xf32, #tpu.memory_space<vmem>>, vector<16x1xf32>
    %24 = vector.broadcast %23 : vector<16x1xf32> to vector<16x128xf32>
    %25 = arith.addf %22, %24 : vector<16x128xf32>
    %cst_11 = arith.constant 5.000000e-01 : f32
    %26 = vector.broadcast %cst_11 : f32 to vector<16x128xf32>
    %27 = arith.mulf %26, %25 : vector<16x128xf32>
    %28 = math.tanh %27 : vector<16x128xf32>
    %cst_12 = arith.constant 5.000000e-01 : f32
    %29 = vector.broadcast %cst_12 : f32 to vector<16x128xf32>
    %30 = arith.mulf %29, %28 : vector<16x128xf32>
    %cst_13 = arith.constant 5.000000e-01 : f32
    %31 = vector.broadcast %cst_13 : f32 to vector<16x128xf32>
    %32 = arith.addf %30, %31 : vector<16x128xf32>
    %33 = arith.mulf %25, %32 : vector<16x128xf32>
    %c0_14 = arith.constant 0 : index
    %c0_15 = arith.constant 0 : index
    %34 = vector.load %arg7[%c0_14, %c0_15] : memref<32x16xf32, #tpu.memory_space<vmem>>, vector<32x16xf32>
    %cst_16 = arith.constant dense<0.000000e+00> : vector<32x128xf32>
    %35 = tpu.matmul %34, %33, %cst_16 {dimension_numbers = #tpu.dot_dimension_numbers<[1], [0], [0], [1], [0, 0, 1, 1], [], []>} : vector<32x16xf32>, vector<16x128xf32>, vector<32x128xf32> -> vector<32x128xf32>
    %c0_17 = arith.constant 0 : index
    %c0_18 = arith.constant 0 : index
    %36 = vector.load %arg8[%c0_17, %c0_18] : memref<32x1xf32, #tpu.memory_space<vmem>>, vector<32x1xf32>
    %37 = vector.broadcast %36 : vector<32x1xf32> to vector<32x128xf32>
    %38 = arith.addf %35, %37 : vector<32x128xf32>
    %cst_19 = arith.constant 5.000000e-01 : f32
    %39 = vector.broadcast %cst_19 : f32 to vector<32x128xf32>
    %40 = arith.mulf %39, %38 : vector<32x128xf32>
    %41 = math.tanh %40 : vector<32x128xf32>
    %cst_20 = arith.constant 5.000000e-01 : f32
    %42 = vector.broadcast %cst_20 : f32 to vector<32x128xf32>
    %43 = arith.mulf %42, %41 : vector<32x128xf32>
    %cst_21 = arith.constant 5.000000e-01 : f32
    %44 = vector.broadcast %cst_21 : f32 to vector<32x128xf32>
    %45 = arith.addf %43, %44 : vector<32x128xf32>
    %46 = arith.mulf %38, %45 : vector<32x128xf32>
    %c0_22 = arith.constant 0 : index
    %c0_23 = arith.constant 0 : index
    %47 = vector.load %arg9[%c0_22, %c0_23] : memref<64x32xf32, #tpu.memory_space<vmem>>, vector<64x32xf32>
    %cst_24 = arith.constant dense<0.000000e+00> : vector<64x128xf32>
    %48 = tpu.matmul %47, %46, %cst_24 {dimension_numbers = #tpu.dot_dimension_numbers<[1], [0], [0], [1], [0, 0, 1, 1], [], []>} : vector<64x32xf32>, vector<32x128xf32>, vector<64x128xf32> -> vector<64x128xf32>
    %c0_25 = arith.constant 0 : index
    %c0_26 = arith.constant 0 : index
    %49 = vector.load %arg10[%c0_25, %c0_26] : memref<64x1xf32, #tpu.memory_space<vmem>>, vector<64x1xf32>
    %50 = vector.broadcast %49 : vector<64x1xf32> to vector<64x128xf32>
    %51 = arith.addf %48, %50 : vector<64x128xf32>
    %cst_27 = arith.constant 5.000000e-01 : f32
    %52 = vector.broadcast %cst_27 : f32 to vector<64x128xf32>
    %53 = arith.mulf %52, %51 : vector<64x128xf32>
    %54 = math.tanh %53 : vector<64x128xf32>
    %cst_28 = arith.constant 5.000000e-01 : f32
    %55 = vector.broadcast %cst_28 : f32 to vector<64x128xf32>
    %56 = arith.mulf %55, %54 : vector<64x128xf32>
    %cst_29 = arith.constant 5.000000e-01 : f32
    %57 = vector.broadcast %cst_29 : f32 to vector<64x128xf32>
    %58 = arith.addf %56, %57 : vector<64x128xf32>
    %59 = arith.mulf %51, %58 : vector<64x128xf32>
    %c0_30 = arith.constant 0 : index
    %c0_31 = arith.constant 0 : index
    %60 = vector.load %arg11[%c0_30, %c0_31] : memref<64x1xf32, #tpu.memory_space<vmem>>, vector<64x1xf32>
    %61 = vector.broadcast %60 : vector<64x1xf32> to vector<64x128xf32>
    %62 = arith.mulf %61, %59 : vector<64x128xf32>
    %cst_32 = arith.constant dense<0.000000e+00> : vector<128xf32>
    %63 = vector.multi_reduction <add>, %62, %cst_32 [0] : vector<64x128xf32> to vector<128xf32>
    %64 = vector.shape_cast %63 : vector<128xf32> to vector<1x128xf32>
    %c0_33 = arith.constant 0 : index
    %c0_34 = arith.constant 0 : index
    %65 = vector.load %arg12[%c0_33, %c0_34] : memref<1x1xf32, #tpu.memory_space<vmem>>, vector<1x1xf32>
    %66 = vector.broadcast %65 : vector<1x1xf32> to vector<1x128xf32>
    %67 = arith.addf %64, %66 : vector<1x128xf32>
    %c0_35 = arith.constant 0 : index
    %c0_36 = arith.constant 0 : index
    %68 = vector.load %arg13[%c0_35, %c0_36] : memref<1x128xf32, #tpu.memory_space<vmem>>, vector<1x128xf32>
    tpu.vector_store %arg13[%c0_35, %c0_36], %67 {strides = array<i32>} : memref<1x128xf32, #tpu.memory_space<vmem>>, vector<1x128xf32>,
    return
  }
  func.func @transform_0(%arg0: i32) -> (i32, i32) {
    %c0_i32 = arith.constant 0 : i32
    %c0_i32_0 = arith.constant 0 : i32
    return %c0_i32, %arg0 : i32, i32
  }
  func.func @transform_1(%arg0: i32) -> (i32, i32) {
    %c0_i32 = arith.constant 0 : i32
    %c0_i32_0 = arith.constant 0 : i32
    %c0_i32_1 = arith.constant 0 : i32
    return %c0_i32, %c0_i32_0 : i32, i32
  }
  func.func @transform_2(%arg0: i32) -> (i32, i32) {
    %c0_i32 = arith.constant 0 : i32
    %c0_i32_0 = arith.constant 0 : i32
    %c0_i32_1 = arith.constant 0 : i32
    return %c0_i32, %c0_i32_0 : i32, i32
  }
  func.func @transform_3(%arg0: i32) -> (i32, i32) {
    %c0_i32 = arith.constant 0 : i32
    %c0_i32_0 = arith.constant 0 : i32
    %c0_i32_1 = arith.constant 0 : i32
    return %c0_i32, %c0_i32_0 : i32, i32
  }
  func.func @transform_4(%arg0: i32) -> (i32, i32) {
    %c0_i32 = arith.constant 0 : i32
    %c0_i32_0 = arith.constant 0 : i32
    %c0_i32_1 = arith.constant 0 : i32
    return %c0_i32, %c0_i32_0 : i32, i32
  }
  func.func @transform_5(%arg0: i32) -> (i32, i32) {
    %c0_i32 = arith.constant 0 : i32
    %c0_i32_0 = arith.constant 0 : i32
    %c0_i32_1 = arith.constant 0 : i32
    return %c0_i32, %c0_i32_0 : i32, i32
  }
  func.func @transform_6(%arg0: i32) -> (i32, i32) {
    %c0_i32 = arith.constant 0 : i32
    %c0_i32_0 = arith.constant 0 : i32
    %c0_i32_1 = arith.constant 0 : i32
    return %c0_i32, %c0_i32_0 : i32, i32
  }
  func.func @transform_7(%arg0: i32) -> (i32, i32) {
    %c0_i32 = arith.constant 0 : i32
    %c0_i32_0 = arith.constant 0 : i32
    %c0_i32_1 = arith.constant 0 : i32
    return %c0_i32, %c0_i32_0 : i32, i32
  }
  func.func @transform_8(%arg0: i32) -> (i32, i32) {
    %c0_i32 = arith.constant 0 : i32
    %c0_i32_0 = arith.constant 0 : i32
    %c0_i32_1 = arith.constant 0 : i32
    return %c0_i32, %c0_i32_0 : i32, i32
  }
  func.func @transform_9(%arg0: i32) -> (i32, i32) {
    %c0_i32 = arith.constant 0 : i32
    %c0_i32_0 = arith.constant 0 : i32
    %c0_i32_1 = arith.constant 0 : i32
    return %c0_i32, %c0_i32_0 : i32, i32
  }
  func.func @transform_10(%arg0: i32) -> (i32, i32) {
    %c0_i32 = arith.constant 0 : i32
    %c0_i32_0 = arith.constant 0 : i32
    %c0_i32_1 = arith.constant 0 : i32
    return %c0_i32, %c0_i32_0 : i32, i32
  }
  func.func @transform_11(%arg0: i32) -> (i32, i32) {
    %c0_i32 = arith.constant 0 : i32
    %c0_i32_0 = arith.constant 0 : i32
    %c0_i32_1 = arith.constant 0 : i32
    return %c0_i32, %c0_i32_0 : i32, i32
  }
  func.func @transform_12(%arg0: i32) -> (i32, i32) {
    %c0_i32 = arith.constant 0 : i32
    %c0_i32_0 = arith.constant 0 : i32
    return %c0_i32, %arg0 : i32, i32
  }
}

</mosaic_0001>

<bundles_post_ra>
// kernel: score_model_forward.1
= control target key start
LH: loop header
LB: loop body
LE: loop exit
PB: predicated region body
PF: predicated region fallthrough
CT: control target
= control target key end

     0   :  { %v1248_v0 = vmov 0   ;;  %v56_v7 = vlaneseq  ;;  %vm516_vm0 = vcmask 261120   ;;  %v1249_v63 = vmov 683565275   ;;  %s1563_s1 = inlined_call_operand.vmem [shape: f32[16,1], index: 1, kind: input, shape index: {}]   ;;  %s1564_s2 = inlined_call_operand.vmem [shape: f32[16,1], index: 2, kind: input, shape index: {}]   ;;  %s1565_s11 = inlined_call_operand.<no memory space> [shape: f32[1,1], index: 11, kind: input, shape index: {}]   ;;  %s1566_s3 = inlined_call_operand.vmem [shape: f32[16,1], index: 3, kind: input, shape index: {}]   ;;  %s1567_s5 = inlined_call_operand.vmem [shape: f32[16,1], index: 5, kind: input, shape index: {}]   ;;  %s1568_s7 = inlined_call_operand.vmem [shape: f32[32,1], index: 7, kind: input, shape index: {}]   ;;  %s1569_s0 = inlined_call_operand.vmem [shape: f32[3,128], index: 0, kind: input, shape index: {}]   ;;  %s1570_s9 = inlined_call_operand.vmem [shape: f32[64,1], index: 9, kind: input, shape index: {}]   ;;  %s1571_s10 = inlined_call_operand.vmem [shape: f32[64,1], index: 10, kind: input, shape index: {}]   ;;  %s1572_s4 = inlined_call_operand.vmem [shape: f32[16,32], index: 4, kind: input, shape index: {}]   ;;  %s1573_s6 = inlined_call_operand.vmem [shape: f32[32,16], index: 6, kind: input, shape index: {}]   ;;  %s1574_s8 = inlined_call_operand.vmem [shape: f32[64,32], index: 8, kind: input, shape index: {}]   ;;  %s1575_s12 = inlined_call_operand.vmem [shape: f32[1,128], index: 12, kind: output, shape index: {}]  }
   0x1   :  { %1210 = vset.pattern.permute.xlu0 %v1248_v0  ;;  %v44_v1 = vld [vmem:[%s1563_s1] sm:$0xff]  ;;  %1211 = vset.pattern.permute.xlu1 %v1248_v0  ;;  %v17_v3 = vstv %s1565_s11  ;;  %v45_v4 = vld [vmem:[%s1563_s1 + $0x8] sm:$0xff]  ;;  %v630_v11 = vld [vmem:[%s1568_s7 + $0x10] sm:$0xff] }
   0x2   :  { %v476_v2 = vld [vmem:[%s1564_s2] sm:$0xff]  ;;  %48 = vperm.xlu0 %1210, %v44_v1   ;;  %18 = vst [vmem:[#allocation2] sm:$0x1] %v17_v3  ;;  %v1341_v9 = vshrl.u32 %v56_v7, 7  ;;  %v780_v15 = vld [vmem:[%s1570_s9 + $0x10] sm:$0xff]  ;;  %v477_v24 = vld [vmem:[%s1564_s2 + $0x8] sm:$0xff] }
   0x3   :  { %480 = vperm.xlu1 %1211, %v476_v2   ;;  %v494_v5 = vld [vmem:[%s1566_s3] sm:$0xff]  ;;  %v784_v17 = vld [vmem:[%s1570_s9 + $0x30] sm:$0xff]  ;;  %v495_v25 = vld [vmem:[%s1566_s3 + $0x8] sm:$0xff]  ;;  %v1250_v3 = vmov 2475754826  }
   0x4   :  { %v600_v6 = vld [vmem:[%s1567_s5] sm:$0xff]  ;;  %v508_v10 = vsub.s32 1, %v1341_v9  ;;  %v997_v19 = vld [vmem:[%s1571_s10 + $0x10] sm:$0xff]  ;;  %v601_v26 = vld [vmem:[%s1567_s5 + $0x8] sm:$0xff]  ;;  %v58_v29 = vsub.s32 2, %v1341_v9  ;;  %v490_v32 = vsub.s32 0, %v1341_v9 }
   0x5   :  { %v628_v8 = vld [vmem:[%s1568_s7] sm:$0xff]  ;;  %v1001_v21 = vld [vmem:[%s1571_s10 + $0x30] sm:$0xff]  ;;  %v629_v27 = vld [vmem:[%s1568_s7 + $0x8] sm:$0xff]  ;;  %v1252_v7 = vmov 2102212464  }
   0x6   :  { %53 = vperm.xlu0 %1210, %v45_v4   ;;  %v43_v12 = vld [vmem:[%s1569_s0] sm:$0x7]  ;;  %v631_v28 = vld [vmem:[%s1568_s7 + $0x18] sm:$0xff]  ;;  %v779_v30 = vld [vmem:[%s1570_s9 + $0x8] sm:$0xff] }
   0x7   :  { %v1350_v13 = vrot.slane %v43_v12, %v508_v10  ;;  %v778_v14 = vld [vmem:[%s1570_s9] sm:$0xff]  ;;  %485 = vperm.xlu1 %1211, %v477_v24   ;;  %v59_v31 = vrot.slane %v43_v12, %v58_v29  ;;  %v781_v34 = vld [vmem:[%s1570_s9 + $0x18] sm:$0xff]  ;;  %v1409_v38 = vrot.slane %v43_v12, %v490_v32  ;;  %v783_v41 = vld [vmem:[%s1570_s9 + $0x28] sm:$0xff]  ;;  %v1253_v10 = vmov 920167782  }
   0x8   :  { %v782_v16 = vld [vmem:[%s1570_s9 + $0x20] sm:$0xff]  ;;  %v785_v49 = vld [vmem:[%s1570_s9 + $0x38] sm:$0xff]  ;;  %v996_v58 = vld [vmem:[%s1571_s10 + $0x8] sm:$0xff] }
   0x9   :  { %v995_v18 = vld [vmem:[%s1571_s10] sm:$0xff]  ;;  %v998_v12 = vld [vmem:[%s1571_s10 + $0x18] sm:$0xff] }
   0xa   :  { %498 = vperm.xlu0 %1210, %v494_v5   ;;  %v999_v20 = vld [vmem:[%s1571_s10 + $0x20] sm:$0xff]  ;;  %v1251_v5 = vmov 2131351028  }
   0xb   :  { %v1064_v22 = vld [vmem:[#allocation2] sm:$0x1]  ;;  %503 = vperm.xlu1 %1211, %v495_v25  }
   0xc   :  { %v514_v23 = vld [vmem:[%s1572_s4] sm:$0xff] }
   0xd   :  { %1142 = vmatprep.mubr.msk.f32.mxu0 %vm516_vm0, %v514_v23 }
   0xe   :  { %604 = vperm.xlu0 %1210, %v600_v6  }
   0xf   :  { %609 = vperm.xlu1 %1211, %v601_v26  }
  0x12   :  { %634 = vperm.xlu0 %1210, %v628_v8  }
  0x13   :  { %639 = vperm.xlu1 %1211, %v629_v27   ;;  %v1000_v27 = vld [vmem:[%s1571_s10 + $0x28] sm:$0xff] }
  0x16   :  { %644 = vperm.xlu0 %1210, %v630_v11  }
  0x17   :  { %649 = vperm.xlu1 %1211, %v631_v28  }
  0x1a   :  { %788 = vperm.xlu0 %1210, %v778_v14  }
  0x1b   :  { %793 = vperm.xlu1 %1211, %v779_v30  }
  0x1e   :  { %798 = vperm.xlu0 %1210, %v780_v15  }
  0x1f   :  { %803 = vperm.xlu1 %1211, %v781_v34  }
  0x22   :  { %808 = vperm.xlu0 %1210, %v782_v16  }
  0x23   :  { %813 = vperm.xlu1 %1211, %v783_v41  }
  0x26   :  { %818 = vperm.xlu0 %1210, %v784_v17  }
  0x27   :  { %823 = vperm.xlu1 %1211, %v785_v49  }
  0x2a   :  { %1005 = vperm.xlu0 %1210, %v995_v18  }
  0x2b   :  { %1010 = vperm.xlu1 %1211, %v996_v58  }
  0x2e   :  { %1015 = vperm.xlu0 %1210, %v997_v19   ;;  %v1254_v19 = vmov 1326507024  }
  0x2f   :  { %1020 = vperm.xlu1 %1211, %v998_v12  }
  0x32   :  { %1025 = vperm.xlu0 %1210, %v999_v20  }
  0x33   :  { %1030 = vperm.xlu1 %1211, %v1000_v27  }
  0x36   :  { %1035 = vperm.xlu0 %1210, %v1001_v21  }
  0x3a   :  { %1067 = vperm.xlu0 %1210, %v1064_v22  }
  0x81   :  { %v49_v33 = vpop.permute.xlu0 %48 }
  0x82   :  { %v1403_v35 = vmul.f32 %v59_v31, %v49_v33  ;;  %v481_v40 = vpop.permute.xlu1 %480 }
  0x83   :  { %v492_v46 = vmul.f32 %v1409_v38, %v481_v40 }
  0x84   :  { %v62_v36 = vand.u32 2147483647, %v1403_v35  ;;  %v65_v37 = vand.u32 2139095040, %v1403_v35  ;;  %vm64_vm15 = vcmp.lt.s32.totalorder %v1403_v35, 0 }
  0x85   :  { %v54_v39 = vpop.permute.xlu0 %53 }
  0x86   :  { %v66_v42 = vshrl.u32 %v65_v37, 23  ;;  %v1414_v43 = vmul.f32 %v59_v31, %v54_v39  ;;  %v69_v44 = vand.u32 8388607, %v62_v36 }
  0x88   :  { %v1080_v45 = vadd.s32 4294967169, %v66_v42  ;;  %v169_v47 = vand.u32 2139095040, %v1414_v43  ;;  %v70_v52 = vor.u32 8388608, %v69_v44  ;;  %v166_v54 = vand.u32 2147483647, %v1414_v43 }
  0x89   :  { %v499_v48 = vpop.permute.xlu0 %498 }
  0x8a   :  { %v72_v50 = vadd.s32 1, %v1080_v45  ;;  %v510_v51 = vmul.f32 %v1350_v13, %v499_v48  ;;  %v170_v53 = vshrl.u32 %v169_v47, 23  ;;  %v1430_v61 = vshll.u32 %v70_v52, 8  ;;  %v1002_v47 = vld [vmem:[%s1571_s10 + $0x38] sm:$0xff] }
  0x8b   :  { %v173_v1 = vand.u32 8388607, %v166_v54  ;;  %1040 = vperm.xlu1 %1211, %v1002_v47  }
  0x8c   :  { %vm73_vm1 = vcmp.gt.s32.totalorder %v72_v50, 0  ;;  %v1425_v55 = vadd.f32 %v510_v51, %v492_v46  ;;  %v1084_v57 = vadd.s32 4294967169, %v170_v53 }
  0x8d   :  { %v74_v56 = vsel %vm73_vm1, %v72_v50, 0  ;;  %v174_v39 = vor.u32 8388608, %v173_v1  ;;  %vm63_vm1 = vcmp.le.f32.partialorder %v62_v36, 0.7853982 }
  0x8e   :  { %v75_v59 = vshrl.u32 %v74_v56, 5  ;;  %v76_v60 = vand.u32 31, %v74_v56  ;;  %v176_v2 = vadd.s32 1, %v1084_v57 }
  0x8f   :  { %v214_v56 = vshll.u32 %v174_v39, 8 }
  0x90   :  { %v77_v62 = vsub.s32 32, %v76_v60  ;;  %v79_v0 = vshll.u32 %v1249_v63, %v76_v60  ;;  %v82_v4 = vshll.u32 %v1250_v3, %v76_v60  ;;  %v85_v6 = vshll.u32 %v1251_v5, %v76_v60 }
  0x91   :  { %v88_v8 = vshll.u32 %v1252_v7, %v76_v60  ;;  %v91_v11 = vshll.u32 %v1253_v10, %v76_v60  ;;  %vm94_vm2 = vcmp.lt.s32.totalorder %v75_v59, 1  ;;  %vm96_vm3 = vcmp.lt.s32.totalorder %v75_v59, 3 }
  0x92   :  { %v80_v14 = vshrl.u32 %v1250_v3, %v77_v62  ;;  %v83_v15 = vshrl.u32 %v1251_v5, %v77_v62  ;;  %v86_v16 = vshrl.u32 %v1252_v7, %v77_v62  ;;  %v78_v17 = vshrl.u32 %v1249_v63, %v77_v62 }
  0x93   :  { %v89_v18 = vshrl.u32 %v1253_v10, %v77_v62  ;;  %v92_v20 = vshrl.u32 %v1254_v19, %v77_v62  ;;  %vm177_vm4 = vcmp.gt.s32.totalorder %v176_v2, 0  ;;  %vm97_vm5 = vcmp.lt.s32.totalorder %v75_v59, 4 }
  0x94   :  { %v81_v21 = vor.u32 %v80_v14, %v79_v0  ;;  %v84_v22 = vor.u32 %v83_v15, %v82_v4  ;;  %v87_v23 = vor.u32 %v86_v16, %v85_v6  ;;  %v178_v26 = vsel %vm177_vm4, %v176_v2, 0 }
  0x95   :  { %v90_v24 = vor.u32 %v89_v18, %v88_v8  ;;  %v93_v25 = vor.u32 %v92_v20, %v91_v11  ;;  %vm95_vm6 = vcmp.lt.s32.totalorder %v75_v59, 2  ;;  %v180_v42 = vand.u32 31, %v178_v26 }
  0x96   :  { %v98_v28 = vsel %vm94_vm2, %v78_v17, %v81_v21  ;;  %v99_v29 = vsel %vm97_vm5, %v87_v23, 2102212464  ;;  %v102_v30 = vsel %vm94_vm2, %v81_v21, %v84_v22  ;;  %v106_v31 = vsel %vm94_vm2, %v84_v22, %v87_v23 }
  0x97   :  { %v100_v33 = vsel %vm96_vm3, %v84_v22, %v99_v29  ;;  %v103_v34 = vsel %vm97_vm5, %v90_v24, 920167782  ;;  %v107_v37 = vsel %vm97_vm5, %v93_v25, 1326507024  ;;  %v179_v52 = vshrl.u32 %v178_v26, 5 }
  0x98   :  { %v104_v40 = vsel %vm96_vm3, %v87_v23, %v103_v34  ;;  %v108_v41 = vsel %vm96_vm3, %v90_v24, %v107_v37  ;;  %v101_v44 = vsel %vm95_vm6, %v98_v28, %v100_v33  ;;  %v181_v53 = vsub.s32 32, %v180_v42 }
  0x99   :  { %v105_v45 = vsel %vm95_vm6, %v102_v30, %v104_v40  ;;  %v109_v46 = vsel %vm95_vm6, %v106_v31, %v108_v41  ;;  %v117_v57 = vmul.u32 %v1430_v61, %v101_v44  ;;  %v183_v58 = vshll.u32 %v1249_v63, %v180_v42 }
  0x9a   :  { %v1452_v48 = vmul.u32.u64.low %v1430_v61, %v109_v46  ;;  %v1453_v49 = vmul.u32.u64.high %v1430_v61, %v109_v46, %v1452_v48  ;;  %v1456_v50 = vmul.u32.u64.low %v1430_v61, %v105_v45  ;;  %v1457_v51 = vmul.u32.u64.high %v1430_v61, %v105_v45, %v1456_v50 }
  0x9b   :  { %v186_v59 = vshll.u32 %v1250_v3, %v180_v42  ;;  %v189_v60 = vshll.u32 %v1251_v5, %v180_v42  ;;  %v184_v62 = vshrl.u32 %v1250_v3, %v181_v53  ;;  %v187_v0 = vshrl.u32 %v1251_v5, %v181_v53 }
  0x9c   :  { %v190_v1 = vshrl.u32 %v1252_v7, %v181_v53  ;;  %v192_v2 = vshll.u32 %v1252_v7, %v180_v42  ;;  %vm119_vm7 = vc.u32 %v1453_v49, %v1456_v50  ;;  %v120_v4 = vadd.s32 1, %v1457_v51 }
  0x9d   :  { %v193_v6 = vshrl.u32 %v1253_v10, %v181_v53  ;;  %v195_v8 = vshll.u32 %v1253_v10, %v180_v42  ;;  %v185_v11 = vor.u32 %v184_v62, %v183_v58  ;;  %v188_v12 = vor.u32 %v187_v0, %v186_v59 }
  0x9e   :  { %v191_v14 = vor.u32 %v190_v1, %v189_v60  ;;  %v196_v61 = vshrl.u32 %v1254_v19, %v181_v53  ;;  %v121_v15 = vsel %vm119_vm7, %v120_v4, %v1457_v51  ;;  %vm198_vm8 = vcmp.lt.s32.totalorder %v179_v52, 1 }
  0x9f   :  { %v194_v16 = vor.u32 %v193_v6, %v192_v2  ;;  %vm201_vm9 = vcmp.lt.s32.totalorder %v179_v52, 4  ;;  %v122_v3 = vadd.s32 %v121_v15, %v117_v57  ;;  %vm200_vm10 = vcmp.lt.s32.totalorder %v179_v52, 3 }
  0xa0   :  { %v197_v5 = vor.u32 %v196_v61, %v195_v8  ;;  %v203_v7 = vsel %vm201_vm9, %v191_v14, 2102212464  ;;  %v182_v17 = vshrl.u32 %v1249_v63, %v181_v53  ;;  %v206_v18 = vsel %vm198_vm8, %v185_v11, %v188_v12 }
  0xa1   :  { %v207_v20 = vsel %vm201_vm9, %v194_v16, 920167782  ;;  %v210_v21 = vsel %vm198_vm8, %v188_v12, %v191_v14  ;;  %v123_v22 = vadd.s32 536870912, %v122_v3  ;;  %vm199_vm11 = vcmp.lt.s32.totalorder %v179_v52, 2 }
  0xa2   :  { %v208_v10 = vsel %vm200_vm10, %v191_v14, %v207_v20  ;;  %v211_v23 = vsel %vm201_vm9, %v197_v5, 1326507024  ;;  %v202_v24 = vsel %vm198_vm8, %v182_v17, %v185_v11  ;;  %v204_v19 = vsel %vm200_vm10, %v188_v12, %v203_v7 }
  0xa3   :  { %v209_v25 = vsel %vm199_vm11, %v206_v18, %v208_v10  ;;  %v212_v26 = vsel %vm200_vm10, %v194_v16, %v211_v23  ;;  %v1467_v27 = vshrl.u32 %v123_v22, 30  ;;  %v205_v34 = vsel %vm199_vm11, %v202_v24, %v204_v19 }
  0xa4   :  { %v213_v28 = vsel %vm199_vm11, %v210_v21, %v212_v26  ;;  %v1469_v29 = vmul.u32.u64.low %v214_v56, %v209_v25  ;;  %v1470_v30 = vmul.u32.u64.high %v214_v56, %v209_v25, %v1469_v29  ;;  %v221_v40 = vmul.u32 %v214_v56, %v205_v34 }
  0xa5   :  { %v1472_v31 = vmul.u32.u64.low %v214_v56, %v213_v28  ;;  %v1473_v33 = vmul.u32.u64.high %v214_v56, %v213_v28, %v1472_v31  ;;  %v125_v63 = vshll.u32 %v1467_v27, 30  ;;  %v118_v58 = vadd.s32 %v1456_v50, %v1453_v49 }
  0xa6   :  { %v224_v39 = vadd.s32 1, %v1470_v30  ;;  %v148_v24 = vsub.s32 4, %v1467_v27  ;;  %vm168_vm2 = vcmp.lt.s32.totalorder %v1414_v43, 0  ;;  %vm167_vm3 = vcmp.le.f32.partialorder %v166_v54, 0.7853982 }
  0xa7   :  { %v126_v37 = vsub.s32 %v122_v3, %v125_v63  ;;  %vm223_vm12 = vc.u32 %v1473_v33, %v1469_v29  ;;  %v222_v3 = vadd.s32 %v1469_v29, %v1473_v33  ;;  %vm154_vm4 = vweird.f32 %v1403_v35 }
  0xa8   :  { %v225_v42 = vsel %vm223_vm12, %v224_v39, %v1470_v30  ;;  %v149_v29 = vsel %vm64_vm15, %v148_v24, %v1467_v27 }
  0xa9   :  { %v128_v41 = vsub.s32 0, %v126_v37  ;;  %v226_v44 = vadd.s32 %v225_v42, %v221_v40  ;;  %v151_v36 = vsel %vm63_vm1, 0, %v149_v29 }
  0xaa   :  { %v155_v34 = vadd.s32 3, %v151_v36  ;;  %v363_v27 = vand.u32 3, %v151_v36 }
  0xab   :  { %v1081_v45 = vmin.u32 %v128_v41, %v126_v37  ;;  %v227_v46 = vadd.s32 536870912, %v226_v44 }
  0xac   :  { %v156_v42 = vand.u32 3, %v155_v34  ;;  %vm364_vm7 = vcmp.lt.s32.totalorder %v363_v27, 2  ;;  %vm365_vm8 = vcmp.eq.s32.totalorder %v363_v27, 0  ;;  %vm368_vm9 = vcmp.eq.s32.totalorder %v363_v27, 2  ;;  %v770_v34 = vld [vmem:[%s1574_s8] sm:$0xff] }
  0xad   :  { %v130_v47 = vclz %v1081_v45  ;;  %v228_v48 = vshrl.u32 %v227_v46, 30  ;;  %1163 = vmatprep.mubr.msk.f32.mxu1 %vm516_vm0, %v770_v34 }
  0xae   :  { %vm158_vm5 = vcmp.eq.s32.totalorder %v156_v42, 0  ;;  %vm161_vm6 = vcmp.eq.s32.totalorder %v156_v42, 2  ;;  %vm157_vm10 = vcmp.lt.s32.totalorder %v156_v42, 2 }
  0xaf   :  { %v1082_v51 = vadd.s32 4294967294, %v130_v47  ;;  %v229_v52 = vshll.u32 %v228_v48, 30  ;;  %v252_v28 = vsub.s32 4, %v228_v48 }
  0xb1   :  { %vm1083_vm13 = vcmp.lt.s32.totalorder %v1082_v51, 0  ;;  %v230_v57 = vsub.s32 %v226_v44, %v229_v52  ;;  %v253_v33 = vsel %vm168_vm2, %v252_v28, %v228_v48 }
  0xb2   :  { %v133_v53 = vsel %vm1083_vm13, 0, %v1082_v51 }
  0xb3   :  { %v134_v59 = vsub.s32 32, %v133_v53  ;;  %v138_v56 = vsub.s32 4294967266, %v133_v53  ;;  %v232_v60 = vsub.s32 0, %v230_v57  ;;  %v135_v62 = vshll.u32 %v126_v37, %v133_v53 }
  0xb4   :  { %v255_v37 = vsel %vm167_vm3, 0, %v253_v33  ;;  %v626_v33 = vld [vmem:[%s1573_s6 + $0x10] sm:$0xff] }
  0xb5   :  { %v136_v0 = vshrl.u32 %v118_v58, %v134_v59  ;;  %v139_v1 = vadd.s32 127, %v138_v56  ;;  %v1085_v2 = vmin.u32 %v232_v60, %v230_v57  ;;  %v259_v41 = vadd.s32 3, %v255_v37 }
  0xb6   :  { %v466_v46 = vand.u32 3, %v255_v37 }
  0xb7   :  { %v137_v4 = vor.u32 %v136_v0, %v135_v62  ;;  %v140_v6 = vshll.u32 %v139_v1, 23  ;;  %v234_v8 = vclz %v1085_v2  ;;  %v260_v47 = vand.u32 3, %v259_v41 }
  0xb8   :  { %vm468_vm11 = vcmp.eq.s32.totalorder %v466_v46, 0  ;;  %vm471_vm12 = vcmp.eq.s32.totalorder %v466_v46, 2 }
  0xb9   :  { %v141_v11 = vor.u32 4788187, %v140_v6  ;;  %v1086_v12 = vadd.s32 4294967294, %v234_v8  ;;  %v144_v61 = vcvt.s32.f32 %v137_v4  ;;  %vm265_vm13 = vcmp.eq.s32.totalorder %v260_v47, 2 }
  0xbb   :  { %v142_v14 = vand.u32 2147483647, %v141_v11  ;;  %vm1087_vm14 = vcmp.lt.s32.totalorder %v1086_v12, 0 }
  0xbc   :  { %v237_v16 = vsel %vm1087_vm14, 0, %v1086_v12  ;;  %vm262_vm14 = vcmp.eq.s32.totalorder %v260_v47, 0 }
  0xbd   :  { %v145_v15 = vmul.f32 %v144_v61, %v142_v14  ;;  %v238_v49 = vsub.s32 32, %v237_v16  ;;  %v242_v50 = vsub.s32 4294967266, %v237_v16  ;;  %v239_v7 = vshll.u32 %v230_v57, %v237_v16  ;;  %v486_v16 = vpop.permute.xlu1 %485 }
  0xbf   :  { %v146_v5 = vxor.u32 2147483648, %v145_v15  ;;  %v240_v17 = vshrl.u32 %v222_v3, %v238_v49  ;;  %v243_v18 = vadd.s32 127, %v242_v50  ;;  %v493_v3 = vmul.f32 %v1409_v38, %v486_v16 }
  0xc1   :  { %v147_v20 = vsel %vm64_vm15, %v146_v5, %v145_v15  ;;  %v241_v21 = vor.u32 %v240_v17, %v239_v7  ;;  %v244_v22 = vshll.u32 %v243_v18, 23  ;;  %vm261_vm15 = vcmp.lt.s32.totalorder %v260_v47, 2  ;;  %v504_v49 = vpop.permute.xlu1 %503 }
  0xc2   :  { %v150_v10 = vsel %vm63_vm1, %v1403_v35, %v147_v20  ;;  %vm467_vm1 = vcmp.lt.s32.totalorder %v466_v46, 2  ;;  %v511_v50 = vmul.f32 %v1350_v13, %v504_v49  ;;  %v624_v35 = vld [vmem:[%s1573_s6] sm:$0xff]  ;;  %v772_v49 = vld [vmem:[%s1574_s8 + $0x10] sm:$0xff] }
  0xc3   :  { %v245_v23 = vor.u32 4788187, %v244_v22  ;;  %v248_v25 = vcvt.s32.f32 %v241_v21  ;;  %1212 = vcosq.f32 %v150_v10  ;;  %v605_v22 = vpop.permute.xlu0 %604 }
  0xc4   :  { %1214 = vsinq.f32 %v150_v10  ;;  %v513_v5 = vadd.f32 %v511_v50, %v493_v3  ;;  %v771_v3 = vld [vmem:[%s1574_s8 + $0x8] sm:$0xff]  ;;  %v773_v50 = vld [vmem:[%s1574_s8 + $0x18] sm:$0xff] }
  0xc5   :  { %v246_v19 = vand.u32 2147483647, %v245_v23  ;;  %v610_v20 = vpop.permute.xlu1 %609 }
  0xc7   :  { %v249_v26 = vmul.f32 %v248_v25, %v246_v19 }
  0xc9   :  { %v250_v30 = vxor.u32 2147483648, %v249_v26  ;;  %v640_v37 = vpop.permute.xlu1 %639 }
  0xcb   :  { %v251_v31 = vsel %vm168_vm2, %v250_v30, %v249_v26  ;;  %vm258_vm2 = vweird.f32 %v1414_v43 }
  0xcc   :  { %v254_v63 = vsel %vm167_vm3, %v1414_v43, %v251_v31  ;;  %v515_v43 = vld [vmem:[%s1572_s4 + $0x8] sm:$0xff]  ;;  %vm652_vm3 = vcmask 130048  }
  0xcd   :  { %1216 = vcosq.f32 %v254_v63  ;;  %v1213_v39 = vpop.eup %1212 }
  0xce   :  { %1218 = vsinq.f32 %v254_v63  ;;  %v1215_v40 = vpop.eup %1214  ;;  %v162_v45 = vxor.u32 2147483648, %v1213_v39  ;;  %v627_v63 = vld [vmem:[%s1573_s6 + $0x18] sm:$0xff] }
  0xcf   :  { %v159_v44 = vxor.u32 2147483648, %v1215_v40 }
  0xd0   :  { %v163_v51 = vsel %vm161_vm6, %v162_v45, %v1215_v40  ;;  %v370_v59 = vsel %vm368_vm9, %v162_v45, %v1215_v40  ;;  %v650_v45 = vpop.permute.xlu1 %649 }
  0xd1   :  { %v160_v48 = vsel %vm158_vm5, %v1213_v39, %v159_v44  ;;  %v367_v58 = vsel %vm365_vm8, %v1213_v39, %v159_v44  ;;  %v635_v39 = vpop.permute.xlu0 %634 }
  0xd2   :  { %v164_v56 = vsel %vm157_vm10, %v160_v48, %v163_v51  ;;  %v371_v4 = vsel %vm364_vm7, %v367_v58, %v370_v59 }
  0xd3   :  { %v165_v8 = vsel %vm154_vm4, nan, %v164_v56  ;;  %v372_v61 = vsel %vm154_vm4, nan, %v371_v4 }
  0xd7   :  { %v1217_v54 = vpop.eup %1216 }
  0xd8   :  { %v1219_v52 = vpop.eup %1218  ;;  %v266_v53 = vxor.u32 2147483648, %v1217_v54 }
  0xd9   :  { %v263_v57 = vxor.u32 2147483648, %v1219_v52 }
  0xda   :  { %v267_v60 = vsel %vm265_vm13, %v266_v53, %v1219_v52  ;;  %v473_v62 = vsel %vm471_vm12, %v266_v53, %v1219_v52 }
  0xdb   :  { %v264_v0 = vsel %vm262_vm14, %v1217_v54, %v263_v57  ;;  %v470_v1 = vsel %vm468_vm11, %v1217_v54, %v263_v57  ;;  %v645_v54 = vpop.permute.xlu0 %644 }
  0xdc   :  { %v268_v2 = vsel %vm261_vm15, %v264_v0, %v267_v60  ;;  %v474_v6 = vsel %vm467_vm1, %v470_v1, %v473_v62 }
  0xdd   :  { %v269_v11 = vsel %vm258_vm2, nan, %v268_v2  ;;  %v475_v12 = vsel %vm258_vm2, nan, %v474_v6 }
  0xde   :  { %v1175_v14 = vpack.c.bf16 %v269_v11, %v165_v8  ;;  %v1179_v15 = vpack.c.bf16 %v475_v12, %v372_v61 }
  0xe0   :  { %1176 = vmatprep.subr.bf16.mxu0 %v1175_v14 }
  0xe1   :  { %1178 = vmatpush3.bf16.msra.mxu0 %v1175_v14 }
  0xe2   :  { %1180 = vmatprep.subr.bf16.mxu0 %v1179_v15 }
  0xe5   :  { %1182 = vmatpush3.bf16.msra.mxu0 %v1179_v15 }
  0xe8   :  { %1143 = vmatmul.mubr.msk.f32.vlgmr.msra.gmra.mrb[0].mxu0 %vm516_vm0, %v515_v43 }
  0xe9   :  { %1149 = vmatprep.mubr.msk.f32.mxu0 %vm652_vm3, %v624_v35  ;;  %v775_v35 = vld [vmem:[%s1574_s8 + $0x28] sm:$0xff] }
 0x1bb   :  { %v1144_v7 = vpop.f32.mrb[0].mxu0 }
 0x1bc   :  { %v599_v17 = vadd.f32 %v1144_v7, %v513_v5  ;;  %v589_v18 = vpop.f32.mrb[1].mxu0  ;;  %v774_v5 = vld [vmem:[%s1574_s8 + $0x20] sm:$0xff]  ;;  %v776_v7 = vld [vmem:[%s1574_s8 + $0x30] sm:$0xff] }
 0x1bd   :  { %v598_v21 = vadd.f32 %v589_v18, %v1425_v55  ;;  %v625_v55 = vld [vmem:[%s1573_s6 + $0x8] sm:$0xff]  ;;  %v789_v18 = vpop.permute.xlu0 %788 }
 0x1be   :  { %v613_v10 = vadd.f32 %v610_v20, %v599_v17  ;;  %v777_v17 = vld [vmem:[%s1574_s8 + $0x38] sm:$0xff]  ;;  %v794_v20 = vpop.permute.xlu1 %793 }
 0x1bf   :  { %v612_v38 = vadd.f32 %v605_v22, %v598_v21 }
 0x1c0   :  { %v615_v23 = vmul.f32 0.5, %v613_v10 }
 0x1c1   :  { %v614_v24 = vmul.f32 0.5, %v612_v38  ;;  %v799_v21 = vpop.permute.xlu0 %798 }
 0x1c2   :  { %1220 = vtanh.f32 %v615_v23  ;;  %v804_v22 = vpop.permute.xlu1 %803 }
 0x1c3   :  { %1222 = vtanh.f32 %v614_v24 }
 0x1cc   :  { %v1221_v13 = vpop.eup %1220 }
 0x1cd   :  { %v1223_v19 = vpop.eup %1222  ;;  %v619_v25 = vmul.f32 0.5, %v1221_v13 }
 0x1ce   :  { %v618_v26 = vmul.f32 0.5, %v1223_v19  ;;  %v809_v19 = vpop.permute.xlu0 %808 }
 0x1cf   :  { %v621_v28 = vadd.f32 0.5, %v619_v25 }
 0x1d0   :  { %v620_v29 = vadd.f32 0.5, %v618_v26 }
 0x1d1   :  { %v623_v30 = vmul.f32 %v621_v28, %v613_v10 }
 0x1d2   :  { %v622_v31 = vmul.f32 %v620_v29, %v612_v38 }
 0x1d4   :  { %v1183_v36 = vpack.c.bf16 %v623_v30, %v622_v31  ;;  %v814_v30 = vpop.permute.xlu1 %813 }
 0x1d6   :  { %1184 = vmatprep.subr.bf16.mxu0 %v1183_v36 }
 0x1d7   :  { %1186 = vmatpush3.bf16.msra.mxu0 %v1183_v36 }
 0x1da   :  { %1150 = vmatmul.mubr.msk.f32.vlgmr.msra.gmra.mrb[2].mxu0 %vm652_vm3, %v625_v55 }
 0x1db   :  { %1152 = vmatprep.mubr.msk.f32.mxu0 %vm652_vm3, %v626_v33 }
 0x1de   :  { %1153 = vmatmul.mubr.msk.f32.gmra.mrb[4].mxu0 %vm652_vm3, %v627_v63 }
 0x2ad   :  { %v1151_v40 = vpop.f32.mrb[2].mxu0 }
 0x2ae   :  { %v737_v41 = vadd.f32 %v1151_v40, %v640_v37  ;;  %v731_v42 = vpop.f32.mrb[3].mxu0  ;;  %v819_v37 = vpop.permute.xlu0 %818 }
 0x2af   :  { %v732_v27 = vadd.f32 %v731_v42, %v635_v39 }
 0x2b0   :  { %v751_v44 = vmul.f32 0.5, %v737_v41 }
 0x2b1   :  { %v750_v46 = vmul.f32 0.5, %v732_v27  ;;  %v1154_v47 = vpop.f32.mrb[4].mxu0 }
 0x2b2   :  { %1224 = vtanh.f32 %v751_v44  ;;  %v747_v48 = vadd.f32 %v1154_v47, %v650_v45  ;;  %v741_v51 = vpop.f32.mrb[5].mxu0 }
 0x2b3   :  { %1226 = vtanh.f32 %v750_v46  ;;  %v742_v52 = vadd.f32 %v741_v51, %v645_v54  ;;  %v1006_v51 = vpop.permute.xlu0 %1005 }
 0x2b4   :  { %v753_v53 = vmul.f32 0.5, %v747_v48 }
 0x2b5   :  { %v752_v57 = vmul.f32 0.5, %v742_v52 }
 0x2b6   :  { %1228 = vtanh.f32 %v753_v53 }
 0x2b7   :  { %1230 = vtanh.f32 %v752_v57 }
 0x2bc   :  { %v1225_v58 = vpop.eup %1224 }
 0x2bd   :  { %v1227_v59 = vpop.eup %1226  ;;  %v759_v56 = vmul.f32 0.5, %v1225_v58 }
 0x2be   :  { %v758_v60 = vmul.f32 0.5, %v1227_v59 }
 0x2bf   :  { %v763_v62 = vadd.f32 0.5, %v759_v56 }
 0x2c0   :  { %v1229_v0 = vpop.eup %1228  ;;  %v762_v1 = vadd.f32 0.5, %v758_v60 }
 0x2c1   :  { %v1231_v2 = vpop.eup %1230  ;;  %v767_v4 = vmul.f32 %v763_v62, %v737_v41  ;;  %v761_v6 = vmul.f32 0.5, %v1229_v0  ;;  %v824_v41 = vpop.permute.xlu1 %823 }
 0x2c2   :  { %v766_v8 = vmul.f32 %v762_v1, %v732_v27  ;;  %v760_v11 = vmul.f32 0.5, %v1231_v2 }
 0x2c3   :  { %v765_v12 = vadd.f32 0.5, %v761_v6  ;;  %v1016_v6 = vpop.permute.xlu0 %1015 }
 0x2c4   :  { %v764_v14 = vadd.f32 0.5, %v760_v11  ;;  %v1187_v61 = vpack.c.bf16 %v767_v4, %v766_v8 }
 0x2c5   :  { %v769_v15 = vmul.f32 %v765_v12, %v747_v48  ;;  %v1011_v58 = vpop.permute.xlu1 %1010 }
 0x2c6   :  { %v768_v43 = vmul.f32 %v764_v14, %v742_v52  ;;  %1188 = vmatprep.subr.bf16.mxu1 %v1187_v61 }
 0x2c7   :  { %1190 = vmatpush3.bf16.msra.mxu1 %v1187_v61 }
 0x2c8   :  { %v1191_v16 = vpack.c.bf16 %v769_v15, %v768_v43 }
 0x2c9   :  { %v1021_v43 = vpop.permute.xlu1 %1020 }
 0x2ca   :  { %1192 = vmatprep.subr.bf16.mxu1 %v1191_v16 }
 0x2cb   :  { %1194 = vmatpush3.bf16.msra.mxu1 %v1191_v16 }
 0x2ce   :  { %1164 = vmatmul.mubr.msk.f32.vlgmr.msra.gmra.mrb[0].mxu1 %vm516_vm0, %v771_v3 }
 0x2cf   :  { %1166 = vmatprep.mubr.msk.f32.mxu1 %vm516_vm0, %v772_v49 }
 0x2d2   :  { %1167 = vmatmul.mubr.msk.f32.gmra.mrb[2].mxu1 %vm516_vm0, %v773_v50 }
 0x2d3   :  { %1169 = vmatprep.mubr.msk.f32.mxu1 %vm516_vm0, %v774_v5 }
 0x2d6   :  { %1170 = vmatmul.mubr.msk.f32.gmra.mrb[4].mxu1 %vm516_vm0, %v775_v35 }
 0x2d7   :  { %1172 = vmatprep.mubr.msk.f32.mxu1 %vm516_vm0, %v776_v7 }
 0x2da   :  { %1173 = vmatmul.mubr.msk.f32.gmra.mrb[6].mxu1 %vm516_vm0, %v777_v17 }
 0x3a1   :  { %v1165_v10 = vpop.f32.mrb[0].mxu1 }
 0x3a2   :  { %v922_v38 = vadd.f32 %v1165_v10, %v794_v20  ;;  %v916_v23 = vpop.f32.mrb[1].mxu1 }
 0x3a3   :  { %v917_v24 = vadd.f32 %v916_v23, %v789_v18 }
 0x3a4   :  { %v956_v13 = vmul.f32 0.5, %v922_v38 }
 0x3a5   :  { %v955_v25 = vmul.f32 0.5, %v917_v24  ;;  %v1168_v26 = vpop.f32.mrb[2].mxu1 }
 0x3a6   :  { %1232 = vtanh.f32 %v956_v13  ;;  %v932_v28 = vadd.f32 %v1168_v26, %v804_v22  ;;  %v926_v29 = vpop.f32.mrb[3].mxu1 }
 0x3a7   :  { %1234 = vtanh.f32 %v955_v25  ;;  %v927_v31 = vadd.f32 %v926_v29, %v799_v21  ;;  %v1026_v21 = vpop.permute.xlu0 %1025 }
 0x3a8   :  { %v958_v36 = vmul.f32 0.5, %v932_v28 }
 0x3a9   :  { %v957_v55 = vmul.f32 0.5, %v927_v31  ;;  %v1171_v33 = vpop.f32.mrb[4].mxu1 }
 0x3aa   :  { %1236 = vtanh.f32 %v958_v36  ;;  %v942_v63 = vadd.f32 %v1171_v33, %v814_v30  ;;  %v936_v34 = vpop.f32.mrb[5].mxu1 }
 0x3ab   :  { %1238 = vtanh.f32 %v957_v55  ;;  %v937_v39 = vadd.f32 %v936_v34, %v809_v19  ;;  %v1031_v19 = vpop.permute.xlu1 %1030  ;;  %v1036_v33 = vpop.permute.xlu0 %1035 }
 0x3ac   :  { %v960_v40 = vmul.f32 0.5, %v942_v63 }
 0x3ad   :  { %v959_v42 = vmul.f32 0.5, %v937_v39  ;;  %v1174_v27 = vpop.f32.mrb[6].mxu1 }
 0x3ae   :  { %1240 = vtanh.f32 %v960_v40  ;;  %v952_v44 = vadd.f32 %v1174_v27, %v824_v41  ;;  %v946_v45 = vpop.f32.mrb[7].mxu1 }
 0x3af   :  { %1242 = vtanh.f32 %v959_v42  ;;  %v947_v46 = vadd.f32 %v946_v45, %v819_v37  ;;  %v1041_v40 = vpop.permute.xlu1 %1040 }
 0x3b0   :  { %v1233_v47 = vpop.eup %1232  ;;  %v962_v54 = vmul.f32 0.5, %v952_v44 }
 0x3b1   :  { %v1235_v48 = vpop.eup %1234  ;;  %v972_v52 = vmul.f32 0.5, %v1233_v47  ;;  %v961_v53 = vmul.f32 0.5, %v947_v46 }
 0x3b2   :  { %v971_v57 = vmul.f32 0.5, %v1235_v48  ;;  %1244 = vtanh.f32 %v962_v54  ;;  %v1068_v54 = vpop.permute.xlu0 %1067 }
 0x3b3   :  { %v980_v59 = vadd.f32 0.5, %v972_v52  ;;  %1246 = vtanh.f32 %v961_v53 }
 0x3b4   :  { %v1237_v56 = vpop.eup %1236  ;;  %v979_v60 = vadd.f32 0.5, %v971_v57 }
 0x3b5   :  { %v1239_v62 = vpop.eup %1238  ;;  %v988_v0 = vmul.f32 %v980_v59, %v922_v38  ;;  %v974_v1 = vmul.f32 0.5, %v1237_v56 }
 0x3b6   :  { %v987_v2 = vmul.f32 %v979_v60, %v917_v24  ;;  %v973_v4 = vmul.f32 0.5, %v1239_v62 }
 0x3b7   :  { %v1044_v8 = vmul.f32 %v1011_v58, %v988_v0  ;;  %v982_v11 = vadd.f32 0.5, %v974_v1 }
 0x3b8   :  { %v1241_v12 = vpop.eup %1240  ;;  %v1043_v14 = vmul.f32 %v1006_v51, %v987_v2  ;;  %v981_v61 = vadd.f32 0.5, %v973_v4  ;;  %v1073_v51 = vrot.slane %v1068_v54, %v490_v32 }
 0x3b9   :  { %v1243_v15 = vpop.eup %1242  ;;  %v990_v16 = vmul.f32 %v982_v11, %v932_v28  ;;  %v976_v3 = vmul.f32 0.5, %v1241_v12 }
 0x3ba   :  { %v1051_v49 = vadd.f32 %v1044_v8, %v1043_v14  ;;  %v989_v50 = vmul.f32 %v981_v61, %v927_v31  ;;  %v975_v5 = vmul.f32 0.5, %v1243_v15 }
 0x3bb   :  { %v984_v35 = vadd.f32 0.5, %v976_v3  ;;  %v1046_v22 = vmul.f32 %v1021_v43, %v990_v16 }
 0x3bc   :  { %v1245_v7 = vpop.eup %1244  ;;  %v1045_v17 = vmul.f32 %v1016_v6, %v989_v50  ;;  %v983_v18 = vadd.f32 0.5, %v975_v5 }
 0x3bd   :  { %v1247_v20 = vpop.eup %1246  ;;  %v978_v10 = vmul.f32 0.5, %v1245_v7  ;;  %v992_v23 = vmul.f32 %v984_v35, %v942_v63 }
 0x3be   :  { %v1052_v38 = vadd.f32 %v1051_v49, %v1045_v17  ;;  %v991_v24 = vmul.f32 %v983_v18, %v937_v39  ;;  %v977_v13 = vmul.f32 0.5, %v1247_v20 }
 0x3bf   :  { %v986_v25 = vadd.f32 0.5, %v978_v10  ;;  %v1048_v30 = vmul.f32 %v1031_v19, %v992_v23 }
 0x3c0   :  { %v1047_v26 = vmul.f32 %v1026_v21, %v991_v24  ;;  %v1053_v28 = vadd.f32 %v1052_v38, %v1046_v22  ;;  %v985_v29 = vadd.f32 0.5, %v977_v13 }
 0x3c1   :  { %v994_v36 = vmul.f32 %v986_v25, %v952_v44 }
 0x3c2   :  { %v1054_v31 = vadd.f32 %v1053_v28, %v1047_v26  ;;  %v993_v55 = vmul.f32 %v985_v29, %v947_v46 }
 0x3c3   :  { %v1050_v41 = vmul.f32 %v1041_v40, %v994_v36 }
 0x3c4   :  { %v1049_v34 = vmul.f32 %v1036_v33, %v993_v55  ;;  %v1055_v37 = vadd.f32 %v1054_v31, %v1048_v30 }
 0x3c6   :  { %v1056_v42 = vadd.f32 %v1055_v37, %v1049_v34 }
 0x3c8   :  { %v1057_v27 = vadd.f32 %v1056_v42, %v1050_v41 }
 0x3ca   :  { %v1058_v45 = vrot.slane %v1057_v27, 4 }
 0x3cc   :  { %v1059_v63 = vadd.f32 %v1058_v45, %v1057_v27 }
 0x3ce   :  { %v1060_v39 = vrot.slane %v1059_v63, 2 }
 0x3d0   :  { %v1061_v47 = vadd.f32 %v1060_v39, %v1059_v63 }
 0x3d2   :  { %v1062_v48 = vrot.slane %v1061_v47, 1 }
 0x3d4   :  { %v1063_v52 = vadd.f32 %v1062_v48, %v1061_v47 }
 0x3d6   :  { %v1074_v53 = vadd.f32 %v1073_v51, %v1063_v52 }
 0x3d8   :  { %1075 = vst [vmem:[%s1575_s12] sm:$0x1] %v1074_v53 }

</bundles_post_ra>
